<compile_context>
chip_gen: v6e
topology: v6e:2x2x1
jax: 0.10.0
libtpu: 0.0.40
codegen_flags: <defaults>
</compile_context>

<pallas_src>
import functools

import jax
import jax.numpy as jnp
from jax.experimental import pallas as pl
from jax.experimental.pallas import tpu as pltpu

IN_DIM = 28 * 28          # 784
NUM_CLASSES = 10
OUT_PAD = 128             # lane-dense output tile
NEG_BIG = -1e30           # mask value baked into padded b3 lanes


def _round_up(x, m):
    return (x + m - 1) // m * m


def _pick_tm(batch):
    """Batch tile: multiple of 16 (bf16 sublane pack); >= 2 grid steps once the batch is
    big enough (so v7x's 2 TensorCores both get work); 512-wide tiles for large batches
    (~85% of HBM roofline vs ~63% at 256)."""
    if batch <= 128:
        return max(16, _round_up(batch, 16))
    if batch <= 1024:
        return _round_up((batch + 1) // 2, 128)
    return 512


def _vmem_limit_bytes(in_dim, h_pad, tm, weight_bufs):
    """Explicit VMEM budget: resident weights/biases (x weight_bufs) + double-buffered
    x/out streams + headroom.  Budgeted so large ec_dim works without relying on the
    16/32 MiB default scoped limit (v5e default is only 16 MiB)."""
    bf16, f32 = 2, 4
    weights = (in_dim * h_pad + h_pad * h_pad + h_pad * OUT_PAD) * bf16
    biases = (2 * h_pad + OUT_PAD) * f32
    resident = (weights + biases) * weight_bufs
    streams = 2 * tm * in_dim * bf16 + 2 * tm * OUT_PAD * f32
    need = resident + streams
    # ~50% headroom for layout padding / compiler temporaries; stay under 128 MiB.
    return int(min(max(need * 3 // 2 + (2 << 20), 8 << 20), 127 << 20))


def mlp_kernel(x_ref, w1_ref, b1_ref, w2_ref, b2_ref, w3_ref, b3_ref, o_ref):
    # h1 = relu(x @ W1 + b1)   (bf16 MXU, f32 accumulate, f32 bias/relu)
    h = jnp.dot(x_ref[...], w1_ref[...], preferred_element_type=jnp.float32)
    h = jnp.maximum(h + b1_ref[...], 0.0).astype(w2_ref.dtype)
    # h2 = relu(h1 @ W2 + b2)
    h = jnp.dot(h, w2_ref[...], preferred_element_type=jnp.float32)
    h = jnp.maximum(h + b2_ref[...], 0.0).astype(w3_ref.dtype)
    # logits = h2 @ W3 + b3.  Padded W3 columns are zero and padded b3 lanes are NEG_BIG,
    # so lanes >= 10 are already masked - no iota/compare/select needed here.
    logits = jnp.dot(h, w3_ref[...], preferred_element_type=jnp.float32) + b3_ref[...]
    # Numerically stable log-softmax over the single-vreg-wide logits tile.
    m = jnp.max(logits, axis=-1, keepdims=True)
    shifted = logits - m
    lse = jnp.log(jnp.sum(jnp.exp(shifted), axis=-1, keepdims=True))
    o_ref[...] = shifted - lse


@functools.partial(jax.jit, static_argnames=("tm", "single_buffer_weights"))
def _net_forward_padded(x_pad, w1, b1, w2, b2, w3, b3, *, tm, single_buffer_weights):
    """x_pad: (B_pad, 784) bf16; W* bf16 (out-dims padded); b* f32 (1, padded)."""
    b_pad, in_dim = x_pad.shape
    h_pad = w1.shape[1]
    grid = (b_pad // tm,)
    const = lambda i: (0, 0)

    def wspec(shape):
        # Invariant (resident) blocks: a single buffer is enough since the block index
        # never changes -> halves the resident-weight VMEM footprint.
        if single_buffer_weights:
            return pl.BlockSpec(shape, const, pipeline_mode=pl.Buffered(1))
        return pl.BlockSpec(shape, const)

    vmem_limit = _vmem_limit_bytes(in_dim, h_pad, tm, 1 if single_buffer_weights else 2)

    return pl.pallas_call(
        mlp_kernel,
        out_shape=jax.ShapeDtypeStruct((b_pad, OUT_PAD), jnp.float32),
        grid=grid,
        in_specs=[
            pl.BlockSpec((tm, in_dim), lambda i: (i, 0)),      # x tile (pipelined, K unpadded)
            wspec((in_dim, h_pad)),                            # W1 resident
            wspec((1, h_pad)),                                 # b1 resident
            wspec((h_pad, h_pad)),                             # W2 resident
            wspec((1, h_pad)),                                 # b2 resident
            wspec((h_pad, OUT_PAD)),                           # W3 resident
            wspec((1, OUT_PAD)),                               # b3 resident (lane mask baked in)
        ],
        out_specs=pl.BlockSpec((tm, OUT_PAD), lambda i: (i, 0)),
        compiler_params=pltpu.CompilerParams(
            dimension_semantics=("parallel",),                 # megacore over batch tiles
            vmem_limit_bytes=vmem_limit,
        ),
    )(x_pad, w1, b1, w2, b2, w3, b3)


# Cache whether this JAX build accepts pl.Buffered(1) on the resident blocks.
_SINGLE_BUFFER_OK = None


def net_forward(x, padded_params):
    """x: (B, 784) f32/bf16 -> log_softmax logits (B, 10) f32."""
    global _SINGLE_BUFFER_OK
    w1, b1, w2, b2, w3, b3 = padded_params
    B = x.shape[0]
    tm = _pick_tm(B)
    b_pad = _round_up(B, tm)

    xb = x.astype(jnp.bfloat16)                    # cast only; K stays 784 (no pad pass)
    if b_pad != B:
        xb = jnp.zeros((b_pad, IN_DIM), jnp.bfloat16).at[:B, :].set(xb)

    if _SINGLE_BUFFER_OK is None:
        try:
            out_pad = _net_forward_padded(xb, w1, b1, w2, b2, w3, b3,
                                          tm=tm, single_buffer_weights=True)
            _SINGLE_BUFFER_OK = True
        except Exception:
            _SINGLE_BUFFER_OK = False
            out_pad = _net_forward_padded(xb, w1, b1, w2, b2, w3, b3,
                                          tm=tm, single_buffer_weights=False)
    else:
        out_pad = _net_forward_padded(xb, w1, b1, w2, b2, w3, b3,
                                      tm=tm, single_buffer_weights=_SINGLE_BUFFER_OK)

    # TODO(synk): for large-B training loops, consume the padded (B,128) block (or bf16)
    # directly in the loss to avoid this extra slice pass; sliced here to match (B, 10).
    return out_pad[:B, :NUM_CLASSES]


def init_params(key, ec_dim):
    """Original-shape params: W[in, out] (transposed vs. PyTorch), b ~ N(0,1)."""
    k1, k2, k3, kb1, kb2, kb3 = jax.random.split(key, 6)

    def w_init(k, fan_in, fan_out):
        bound = 1.0 / jnp.sqrt(fan_in)
        return jax.random.uniform(k, (fan_in, fan_out), jnp.float32, -bound, bound)

    w1 = w_init(k1, IN_DIM, ec_dim)
    w2 = w_init(k2, ec_dim, ec_dim)
    w3 = w_init(k3, ec_dim, NUM_CLASSES)
    b1 = jax.random.normal(kb1, (1, ec_dim), jnp.float32)
    b2 = jax.random.normal(kb2, (1, ec_dim), jnp.float32)
    b3 = jax.random.normal(kb3, (1, NUM_CLASSES), jnp.float32)
    return (w1, b1, w2, b2, w3, b3)


def pad_params(params):
    """Zero-pad to MXU-friendly dims, cast weights to bf16 (biases stay f32), and bake
    the padded-logit-lane mask into b3 (f32)."""
    w1, b1, w2, b2, w3, b3 = params
    ec_dim = w1.shape[1]
    # 128 for small ec_dim; multiples of 256 for large ec_dim (full 256x256 MXU passes).
    h_pad = 128 if ec_dim <= 128 else _round_up(ec_dim, 256)

    def pad2(a, r, c, dtype):
        out = jnp.zeros((r, c), dtype)
        return out.at[: a.shape[0], : a.shape[1]].set(a.astype(dtype))

    w1p = pad2(w1, IN_DIM, h_pad, jnp.bfloat16)    # rows stay 784: x is fed unpadded
    w2p = pad2(w2, h_pad, h_pad, jnp.bfloat16)
    w3p = pad2(w3, h_pad, OUT_PAD, jnp.bfloat16)
    b1p = pad2(b1, 1, h_pad, jnp.float32)
    b2p = pad2(b2, 1, h_pad, jnp.float32)
    # Padded W3 columns are zero => logits on lanes >= 10 equal b3 exactly; set those
    # lanes to NEG_BIG in the f32 bias (NOT the bf16 weight) so they never win the row
    # max and contribute exp(-inf)=0 to the log-sum-exp.
    b3p = jnp.full((1, OUT_PAD), NEG_BIG, jnp.float32)
    b3p = b3p.at[:, :NUM_CLASSES].set(b3.astype(jnp.float32))
    return (w1p, b1p, w2p, b2p, w3p, b3p)


if __name__ == "__main__":
    key = jax.random.PRNGKey(0)
    kx, kp = jax.random.split(key)

    ec_dim = 32
    batch = 8
    x = jax.random.normal(kx, (batch, IN_DIM), jnp.float32)
    params = init_params(kp, ec_dim)
    padded = pad_params(params)

    out = net_forward(x, padded)
    jax.block_until_ready(out)

    # Reference in plain JAX with the same bf16-MXU / f32-accumulate math.
    w1, b1, w2, b2, w3, b3 = params
    xb = x.astype(jnp.bfloat16)
    h = jnp.maximum(
        jnp.dot(xb, w1.astype(jnp.bfloat16), preferred_element_type=jnp.float32) + b1, 0.0
    )
    h = jnp.maximum(
        jnp.dot(h.astype(jnp.bfloat16), w2.astype(jnp.bfloat16),
                preferred_element_type=jnp.float32) + b2, 0.0
    )
    logits = (
        jnp.dot(h.astype(jnp.bfloat16), w3.astype(jnp.bfloat16),
                preferred_element_type=jnp.float32) + b3
    )
    ref = jax.nn.log_softmax(logits, axis=1)

    assert out.shape == (batch, NUM_CLASSES)
    assert jnp.allclose(out, ref, atol=1e-3, rtol=1e-3), "mismatch vs reference"

    print("KERNEL_OK")
</pallas_src>

<mosaic_0001>
module attributes {stable_mosaic.version = 11 : i64} {
  func.func @mlp_kernel(%arg0: i32, %arg1: memref<16x784xbf16, #tpu.memory_space<vmem>>, %arg2: memref<784x128xbf16, #tpu.memory_space<vmem>>, %arg3: memref<1x128xf32, #tpu.memory_space<vmem>>, %arg4: memref<128x128xbf16, #tpu.memory_space<vmem>>, %arg5: memref<1x128xf32, #tpu.memory_space<vmem>>, %arg6: memref<128x128xbf16, #tpu.memory_space<vmem>>, %arg7: memref<1x128xf32, #tpu.memory_space<vmem>>, %arg8: memref<16x128xf32, #tpu.memory_space<vmem>>) attributes {dimension_semantics = [#tpu.dimension_semantics<parallel>], iteration_bounds = array<i64: 1>, scalar_prefetch = 0 : i64, scratch_operands = 0 : i64, tpu.core_type = #tpu.core_type<tc>, window_params = [{transform_indices = @transform_0, window_bounds = array<i64: 16, 784>}, {pipeline_mode = #tpu.pipeline_mode<synchronous>, transform_indices = @transform_1, window_bounds = array<i64: 784, 128>}, {pipeline_mode = #tpu.pipeline_mode<synchronous>, transform_indices = @transform_2, window_bounds = array<i64: 1, 128>}, {pipeline_mode = #tpu.pipeline_mode<synchronous>, transform_indices = @transform_3, window_bounds = array<i64: 128, 128>}, {pipeline_mode = #tpu.pipeline_mode<synchronous>, transform_indices = @transform_4, window_bounds = array<i64: 1, 128>}, {pipeline_mode = #tpu.pipeline_mode<synchronous>, transform_indices = @transform_5, window_bounds = array<i64: 128, 128>}, {pipeline_mode = #tpu.pipeline_mode<synchronous>, transform_indices = @transform_6, window_bounds = array<i64: 1, 128>}, {transform_indices = @transform_7, window_bounds = array<i64: 16, 128>}]} {
    %c0 = arith.constant 0 : index
    %c0_0 = arith.constant 0 : index
    %0 = vector.load %arg1[%c0, %c0_0] : memref<16x784xbf16, #tpu.memory_space<vmem>>, vector<16x784xbf16>
    %c0_1 = arith.constant 0 : index
    %c0_2 = arith.constant 0 : index
    %1 = vector.load %arg2[%c0_1, %c0_2] : memref<784x128xbf16, #tpu.memory_space<vmem>>, vector<784x128xbf16>
    %cst = arith.constant dense<0.000000e+00> : vector<16x128xf32>
    %2 = tpu.matmul %0, %1, %cst {dimension_numbers = #tpu.dot_dimension_numbers<[1], [0], [0], [1], [0, 0, 1, 1], [], []>} : vector<16x784xbf16>, vector<784x128xbf16>, vector<16x128xf32> -> vector<16x128xf32>
    %c0_3 = arith.constant 0 : index
    %c0_4 = arith.constant 0 : index
    %3 = vector.load %arg3[%c0_3, %c0_4] : memref<1x128xf32, #tpu.memory_space<vmem>>, vector<1x128xf32>
    %4 = vector.broadcast %3 : vector<1x128xf32> to vector<16x128xf32>
    %5 = arith.addf %2, %4 : vector<16x128xf32>
    %cst_5 = arith.constant 0.000000e+00 : f32
    %6 = vector.broadcast %cst_5 : f32 to vector<16x128xf32>
    %7 = arith.maximumf %5, %6 : vector<16x128xf32>
    %8 = arith.truncf %7 : vector<16x128xf32> to vector<16x128xbf16>
    %c0_6 = arith.constant 0 : index
    %c0_7 = arith.constant 0 : index
    %9 = vector.load %arg4[%c0_6, %c0_7] : memref<128x128xbf16, #tpu.memory_space<vmem>>, vector<128x128xbf16>
    %cst_8 = arith.constant dense<0.000000e+00> : vector<16x128xf32>
    %10 = tpu.matmul %8, %9, %cst_8 {dimension_numbers = #tpu.dot_dimension_numbers<[1], [0], [0], [1], [0, 0, 1, 1], [], []>} : vector<16x128xbf16>, vector<128x128xbf16>, vector<16x128xf32> -> vector<16x128xf32>
    %c0_9 = arith.constant 0 : index
    %c0_10 = arith.constant 0 : index
    %11 = vector.load %arg5[%c0_9, %c0_10] : memref<1x128xf32, #tpu.memory_space<vmem>>, vector<1x128xf32>
    %12 = vector.broadcast %11 : vector<1x128xf32> to vector<16x128xf32>
    %13 = arith.addf %10, %12 : vector<16x128xf32>
    %cst_11 = arith.constant 0.000000e+00 : f32
    %14 = vector.broadcast %cst_11 : f32 to vector<16x128xf32>
    %15 = arith.maximumf %13, %14 : vector<16x128xf32>
    %16 = arith.truncf %15 : vector<16x128xf32> to vector<16x128xbf16>
    %c0_12 = arith.constant 0 : index
    %c0_13 = arith.constant 0 : index
    %17 = vector.load %arg6[%c0_12, %c0_13] : memref<128x128xbf16, #tpu.memory_space<vmem>>, vector<128x128xbf16>
    %cst_14 = arith.constant dense<0.000000e+00> : vector<16x128xf32>
    %18 = tpu.matmul %16, %17, %cst_14 {dimension_numbers = #tpu.dot_dimension_numbers<[1], [0], [0], [1], [0, 0, 1, 1], [], []>} : vector<16x128xbf16>, vector<128x128xbf16>, vector<16x128xf32> -> vector<16x128xf32>
    %c0_15 = arith.constant 0 : index
    %c0_16 = arith.constant 0 : index
    %19 = vector.load %arg7[%c0_15, %c0_16] : memref<1x128xf32, #tpu.memory_space<vmem>>, vector<1x128xf32>
    %20 = vector.broadcast %19 : vector<1x128xf32> to vector<16x128xf32>
    %21 = arith.addf %18, %20 : vector<16x128xf32>
    %cst_17 = arith.constant dense<0xFF800000> : vector<16xf32>
    %22 = vector.multi_reduction <maximumf>, %21, %cst_17 [1] : vector<16x128xf32> to vector<16xf32>
    %23 = vector.shape_cast %22 : vector<16xf32> to vector<16x1xf32>
    %24 = vector.broadcast %23 : vector<16x1xf32> to vector<16x128xf32>
    %25 = arith.subf %21, %24 : vector<16x128xf32>
    %26 = math.exp %25 : vector<16x128xf32>
    %cst_18 = arith.constant dense<0.000000e+00> : vector<16xf32>
    %27 = vector.multi_reduction <add>, %26, %cst_18 [1] : vector<16x128xf32> to vector<16xf32>
    %28 = vector.shape_cast %27 : vector<16xf32> to vector<16x1xf32>
    %29 = math.log %28 : vector<16x1xf32>
    %30 = vector.broadcast %29 : vector<16x1xf32> to vector<16x128xf32>
    %31 = arith.subf %25, %30 : vector<16x128xf32>
    %c0_19 = arith.constant 0 : index
    %c0_20 = arith.constant 0 : index
    %32 = vector.load %arg8[%c0_19, %c0_20] : memref<16x128xf32, #tpu.memory_space<vmem>>, vector<16x128xf32>
    tpu.vector_store %arg8[%c0_19, %c0_20], %31 {strides = array<i32>} : memref<16x128xf32, #tpu.memory_space<vmem>>, vector<16x128xf32>,
    return
  }
  func.func @transform_0(%arg0: i32) -> (i32, i32) {
    %c0_i32 = arith.constant 0 : i32
    %c0_i32_0 = arith.constant 0 : i32
    return %arg0, %c0_i32 : i32, i32
  }
  func.func @transform_1(%arg0: i32) -> (i32, i32) {
    %c0_i32 = arith.constant 0 : i32
    %c0_i32_0 = arith.constant 0 : i32
    %c0_i32_1 = arith.constant 0 : i32
    return %c0_i32, %c0_i32_0 : i32, i32
  }
  func.func @transform_2(%arg0: i32) -> (i32, i32) {
    %c0_i32 = arith.constant 0 : i32
    %c0_i32_0 = arith.constant 0 : i32
    %c0_i32_1 = arith.constant 0 : i32
    return %c0_i32, %c0_i32_0 : i32, i32
  }
  func.func @transform_3(%arg0: i32) -> (i32, i32) {
    %c0_i32 = arith.constant 0 : i32
    %c0_i32_0 = arith.constant 0 : i32
    %c0_i32_1 = arith.constant 0 : i32
    return %c0_i32, %c0_i32_0 : i32, i32
  }
  func.func @transform_4(%arg0: i32) -> (i32, i32) {
    %c0_i32 = arith.constant 0 : i32
    %c0_i32_0 = arith.constant 0 : i32
    %c0_i32_1 = arith.constant 0 : i32
    return %c0_i32, %c0_i32_0 : i32, i32
  }
  func.func @transform_5(%arg0: i32) -> (i32, i32) {
    %c0_i32 = arith.constant 0 : i32
    %c0_i32_0 = arith.constant 0 : i32
    %c0_i32_1 = arith.constant 0 : i32
    return %c0_i32, %c0_i32_0 : i32, i32
  }
  func.func @transform_6(%arg0: i32) -> (i32, i32) {
    %c0_i32 = arith.constant 0 : i32
    %c0_i32_0 = arith.constant 0 : i32
    %c0_i32_1 = arith.constant 0 : i32
    return %c0_i32, %c0_i32_0 : i32, i32
  }
  func.func @transform_7(%arg0: i32) -> (i32, i32) {
    %c0_i32 = arith.constant 0 : i32
    %c0_i32_0 = arith.constant 0 : i32
    return %arg0, %c0_i32 : i32, i32
  }
}

module attributes {stable_mosaic.version = 11 : i64} {
  func.func @mlp_kernel(%arg0: i32, %arg1: memref<16x784xbf16, #tpu.memory_space<vmem>>, %arg2: memref<784x128xbf16, #tpu.memory_space<vmem>>, %arg3: memref<1x128xf32, #tpu.memory_space<vmem>>, %arg4: memref<128x128xbf16, #tpu.memory_space<vmem>>, %arg5: memref<1x128xf32, #tpu.memory_space<vmem>>, %arg6: memref<128x128xbf16, #tpu.memory_space<vmem>>, %arg7: memref<1x128xf32, #tpu.memory_space<vmem>>, %arg8: memref<16x128xf32, #tpu.memory_space<vmem>>) attributes {dimension_semantics = [#tpu.dimension_semantics<parallel>], iteration_bounds = array<i64: 1>, scalar_prefetch = 0 : i64, scratch_operands = 0 : i64, tpu.core_type = #tpu.core_type<tc>, window_params = [{transform_indices = @transform_0, window_bounds = array<i64: 16, 784>}, {pipeline_mode = #tpu.pipeline_mode<synchronous>, transform_indices = @transform_1, window_bounds = array<i64: 784, 128>}, {pipeline_mode = #tpu.pipeline_mode<synchronous>, transform_indices = @transform_2, window_bounds = array<i64: 1, 128>}, {pipeline_mode = #tpu.pipeline_mode<synchronous>, transform_indices = @transform_3, window_bounds = array<i64: 128, 128>}, {pipeline_mode = #tpu.pipeline_mode<synchronous>, transform_indices = @transform_4, window_bounds = array<i64: 1, 128>}, {pipeline_mode = #tpu.pipeline_mode<synchronous>, transform_indices = @transform_5, window_bounds = array<i64: 128, 128>}, {pipeline_mode = #tpu.pipeline_mode<synchronous>, transform_indices = @transform_6, window_bounds = array<i64: 1, 128>}, {transform_indices = @transform_7, window_bounds = array<i64: 16, 128>}]} {
    %c0 = arith.constant 0 : index
    %c0_0 = arith.constant 0 : index
    %0 = vector.load %arg1[%c0, %c0_0] : memref<16x784xbf16, #tpu.memory_space<vmem>>, vector<16x784xbf16>
    %c0_1 = arith.constant 0 : index
    %c0_2 = arith.constant 0 : index
    %1 = vector.load %arg2[%c0_1, %c0_2] : memref<784x128xbf16, #tpu.memory_space<vmem>>, vector<784x128xbf16>
    %cst = arith.constant dense<0.000000e+00> : vector<16x128xf32>
    %2 = tpu.matmul %0, %1, %cst {dimension_numbers = #tpu.dot_dimension_numbers<[1], [0], [0], [1], [0, 0, 1, 1], [], []>} : vector<16x784xbf16>, vector<784x128xbf16>, vector<16x128xf32> -> vector<16x128xf32>
    %c0_3 = arith.constant 0 : index
    %c0_4 = arith.constant 0 : index
    %3 = vector.load %arg3[%c0_3, %c0_4] : memref<1x128xf32, #tpu.memory_space<vmem>>, vector<1x128xf32>
    %4 = vector.broadcast %3 : vector<1x128xf32> to vector<16x128xf32>
    %5 = arith.addf %2, %4 : vector<16x128xf32>
    %cst_5 = arith.constant 0.000000e+00 : f32
    %6 = vector.broadcast %cst_5 : f32 to vector<16x128xf32>
    %7 = arith.maximumf %5, %6 : vector<16x128xf32>
    %8 = arith.truncf %7 : vector<16x128xf32> to vector<16x128xbf16>
    %c0_6 = arith.constant 0 : index
    %c0_7 = arith.constant 0 : index
    %9 = vector.load %arg4[%c0_6, %c0_7] : memref<128x128xbf16, #tpu.memory_space<vmem>>, vector<128x128xbf16>
    %cst_8 = arith.constant dense<0.000000e+00> : vector<16x128xf32>
    %10 = tpu.matmul %8, %9, %cst_8 {dimension_numbers = #tpu.dot_dimension_numbers<[1], [0], [0], [1], [0, 0, 1, 1], [], []>} : vector<16x128xbf16>, vector<128x128xbf16>, vector<16x128xf32> -> vector<16x128xf32>
    %c0_9 = arith.constant 0 : index
    %c0_10 = arith.constant 0 : index
    %11 = vector.load %arg5[%c0_9, %c0_10] : memref<1x128xf32, #tpu.memory_space<vmem>>, vector<1x128xf32>
    %12 = vector.broadcast %11 : vector<1x128xf32> to vector<16x128xf32>
    %13 = arith.addf %10, %12 : vector<16x128xf32>
    %cst_11 = arith.constant 0.000000e+00 : f32
    %14 = vector.broadcast %cst_11 : f32 to vector<16x128xf32>
    %15 = arith.maximumf %13, %14 : vector<16x128xf32>
    %16 = arith.truncf %15 : vector<16x128xf32> to vector<16x128xbf16>
    %c0_12 = arith.constant 0 : index
    %c0_13 = arith.constant 0 : index
    %17 = vector.load %arg6[%c0_12, %c0_13] : memref<128x128xbf16, #tpu.memory_space<vmem>>, vector<128x128xbf16>
    %cst_14 = arith.constant dense<0.000000e+00> : vector<16x128xf32>
    %18 = tpu.matmul %16, %17, %cst_14 {dimension_numbers = #tpu.dot_dimension_numbers<[1], [0], [0], [1], [0, 0, 1, 1], [], []>} : vector<16x128xbf16>, vector<128x128xbf16>, vector<16x128xf32> -> vector<16x128xf32>
    %c0_15 = arith.constant 0 : index
    %c0_16 = arith.constant 0 : index
    %19 = vector.load %arg7[%c0_15, %c0_16] : memref<1x128xf32, #tpu.memory_space<vmem>>, vector<1x128xf32>
    %20 = vector.broadcast %19 : vector<1x128xf32> to vector<16x128xf32>
    %21 = arith.addf %18, %20 : vector<16x128xf32>
    %cst_17 = arith.constant dense<0xFF800000> : vector<16xf32>
    %22 = vector.multi_reduction <maximumf>, %21, %cst_17 [1] : vector<16x128xf32> to vector<16xf32>
    %23 = vector.shape_cast %22 : vector<16xf32> to vector<16x1xf32>
    %24 = vector.broadcast %23 : vector<16x1xf32> to vector<16x128xf32>
    %25 = arith.subf %21, %24 : vector<16x128xf32>
    %26 = math.exp %25 : vector<16x128xf32>
    %cst_18 = arith.constant dense<0.000000e+00> : vector<16xf32>
    %27 = vector.multi_reduction <add>, %26, %cst_18 [1] : vector<16x128xf32> to vector<16xf32>
    %28 = vector.shape_cast %27 : vector<16xf32> to vector<16x1xf32>
    %29 = math.log %28 : vector<16x1xf32>
    %30 = vector.broadcast %29 : vector<16x1xf32> to vector<16x128xf32>
    %31 = arith.subf %25, %30 : vector<16x128xf32>
    %c0_19 = arith.constant 0 : index
    %c0_20 = arith.constant 0 : index
    %32 = vector.load %arg8[%c0_19, %c0_20] : memref<16x128xf32, #tpu.memory_space<vmem>>, vector<16x128xf32>
    tpu.vector_store %arg8[%c0_19, %c0_20], %31 {strides = array<i32>} : memref<16x128xf32, #tpu.memory_space<vmem>>, vector<16x128xf32>,
    return
  }
  func.func @transform_0(%arg0: i32) -> (i32, i32) {
    %c0_i32 = arith.constant 0 : i32
    %c0_i32_0 = arith.constant 0 : i32
    return %arg0, %c0_i32 : i32, i32
  }
  func.func @transform_1(%arg0: i32) -> (i32, i32) {
    %c0_i32 = arith.constant 0 : i32
    %c0_i32_0 = arith.constant 0 : i32
    %c0_i32_1 = arith.constant 0 : i32
    return %c0_i32, %c0_i32_0 : i32, i32
  }
  func.func @transform_2(%arg0: i32) -> (i32, i32) {
    %c0_i32 = arith.constant 0 : i32
    %c0_i32_0 = arith.constant 0 : i32
    %c0_i32_1 = arith.constant 0 : i32
    return %c0_i32, %c0_i32_0 : i32, i32
  }
  func.func @transform_3(%arg0: i32) -> (i32, i32) {
    %c0_i32 = arith.constant 0 : i32
    %c0_i32_0 = arith.constant 0 : i32
    %c0_i32_1 = arith.constant 0 : i32
    return %c0_i32, %c0_i32_0 : i32, i32
  }
  func.func @transform_4(%arg0: i32) -> (i32, i32) {
    %c0_i32 = arith.constant 0 : i32
    %c0_i32_0 = arith.constant 0 : i32
    %c0_i32_1 = arith.constant 0 : i32
    return %c0_i32, %c0_i32_0 : i32, i32
  }
  func.func @transform_5(%arg0: i32) -> (i32, i32) {
    %c0_i32 = arith.constant 0 : i32
    %c0_i32_0 = arith.constant 0 : i32
    %c0_i32_1 = arith.constant 0 : i32
    return %c0_i32, %c0_i32_0 : i32, i32
  }
  func.func @transform_6(%arg0: i32) -> (i32, i32) {
    %c0_i32 = arith.constant 0 : i32
    %c0_i32_0 = arith.constant 0 : i32
    %c0_i32_1 = arith.constant 0 : i32
    return %c0_i32, %c0_i32_0 : i32, i32
  }
  func.func @transform_7(%arg0: i32) -> (i32, i32) {
    %c0_i32 = arith.constant 0 : i32
    %c0_i32_0 = arith.constant 0 : i32
    return %arg0, %c0_i32 : i32, i32
  }
}

</mosaic_0001>

<bundles_post_ra>
// kernel: _net_forward_padded.1
= control target key start
LH: loop header
LB: loop body
LE: loop exit
PB: predicated region body
PF: predicated region fallthrough
CT: control target
= control target key end

     0   :  { %12 = vsyncpa [#allocation3], 0  ;;  %s1485_s0 = inlined_call_operand.hbm [shape: bf16[16,784], index: 0, kind: input, shape index: {}]   ;;  %s1486_s1 = inlined_call_operand.hbm [shape: bf16[784,128], index: 1, kind: input, shape index: {}]   ;;  %s1487_s2 = inlined_call_operand.vmem [shape: f32[1,128], index: 2, kind: input, shape index: {}]   ;;  %s1488_s3 = inlined_call_operand.hbm [shape: bf16[128,128], index: 3, kind: input, shape index: {}]   ;;  %s1489_s4 = inlined_call_operand.vmem [shape: f32[1,128], index: 4, kind: input, shape index: {}]   ;;  %s1490_s5 = inlined_call_operand.hbm [shape: bf16[128,128], index: 5, kind: input, shape index: {}]   ;;  %s1491_s6 = inlined_call_operand.vmem [shape: f32[1,128], index: 6, kind: input, shape index: {}]   ;;  %s1492_s7 = inlined_call_operand.hbm [shape: f32[16,128], index: 7, kind: output, shape index: {}]  }
   0x1   :  { %13 = vsyncpa [#allocation6], 0 }
   0x2   :  { %14 = vsyncpa [#allocation9], 0 }
   0x3   :  { %15 = vsyncpa [#allocation4], 0  ;;  %s1376_s24 = smov [#allocation5]  }
   0x4   :  { %s33_s25 = sshll.u32 %s1376_s24, 4  ;;  %s34_s25 = int_to_ptr.vmem [resolvable:$true] %s33_s25 }
   0x5   :  { %s1276_s26 = scalar_lea.vmem %s34_s25, 6272  ;;  %p1281_p1 = scmp.lt.s32.totalorder %s34_s25, %s34_s25 }
   0x6   :  { %p1277_p0 = scmp.ne.s32.totalorder %s34_s25, %s1276_s26  ;;  %p1282_p2 = scmp.lt.s32.totalorder %s1276_s26, %s1276_s26 }
   0x8   :  { %p1283_p3 = por %p1282_p2, %p1281_p1 }
   0xa   :  { %p1284_p4 = pnand %p1283_p3, %p1277_p0 }
   0xc   :  { %1287 = shalt.err (!%p1284_p4)
}
   0xd   :  { %s1377_s27 = smov 64   ;;  %s1378_s28 = smov 4  }
   0xe   :  { %39 = dma.hbm_to_vmem [thread:$0]  %s1486_s1, 6272, %s34_s25, [#allocation6], %s1377_s27, %s1377_s27, %s1378_s28  }
   0xf   :  { %s1379_s8 = smov [#allocation2]  }
  0x10   :  { %s21_s9 = sshll.u32 %s1379_s8, 4  ;;  %s22_s9 = int_to_ptr.vmem [resolvable:$true] %s21_s9 }
  0x11   :  { %s1296_s10 = scalar_lea.vmem %s22_s9, 896  ;;  %p1301_p6 = scmp.lt.s32.totalorder %s22_s9, %s22_s9 }
  0x12   :  { %p1297_p5 = scmp.ne.s32.totalorder %s22_s9, %s1296_s10  ;;  %p1302_p7 = scmp.lt.s32.totalorder %s1296_s10, %s1296_s10 }
  0x14   :  { %p1303_p8 = por %p1302_p7, %p1301_p6 }
  0x16   :  { %p1304_p9 = pnand %p1303_p8, %p1297_p5 }
  0x18   :  { %1307 = shalt.err (!%p1304_p9)
}
  0x19   :  { %s1380_s11 = smov 448   ;;  %s1381_s12 = smov 28  }
  0x1a   :  { %27 = dma.hbm_to_vmem [thread:$0]  %s1485_s0, 896, %s22_s9, [#allocation3], %s1380_s11, %s1380_s11, %s1381_s12  }
  0x1b   :  { %s1382_s15 = smov [#allocation7]   ;;  %s1383_s17 = smov [#allocation8]  }
  0x1c   :  { %s47_s16 = sshll.u32 %s1382_s15, 4  ;;  %s61_s1 = sshll.u32 %s1383_s17, 4  ;;  %s48_s16 = int_to_ptr.vmem [resolvable:$true] %s47_s16  ;;  %s62_s1 = int_to_ptr.vmem [resolvable:$true] %s61_s1 }
  0x1d   :  { %s1316_s18 = scalar_lea.vmem %s48_s16, 1024  ;;  %p1321_p11 = scmp.lt.s32.totalorder %s48_s16, %s48_s16 }
  0x1e   :  { %p1317_p10 = scmp.ne.s32.totalorder %s48_s16, %s1316_s18  ;;  %p1322_p12 = scmp.lt.s32.totalorder %s1316_s18, %s1316_s18 }
  0x20   :  { %p1323_p13 = por %p1322_p12, %p1321_p11 }
  0x22   :  { %p1324_p0 = pnand %p1323_p13, %p1317_p10 }
  0x24   :  { %1327 = shalt.err (!%p1324_p0)
}
  0x25   :  { %53 = dma.hbm_to_vmem [thread:$0]  %s1488_s3, 1024, %s48_s16, [#allocation6], %s1377_s27, %s1377_s27, %s1378_s28  }
  0x26   :  { %s1336_s0 = scalar_lea.vmem %s62_s1, 1024  ;;  %p1341_p2 = scmp.lt.s32.totalorder %s62_s1, %s62_s1 }
  0x27   :  { %p1337_p1 = scmp.ne.s32.totalorder %s62_s1, %s1336_s0  ;;  %p1342_p3 = scmp.lt.s32.totalorder %s1336_s0, %s1336_s0 }
  0x29   :  { %p1343_p4 = por %p1342_p3, %p1341_p2 }
  0x2b   :  { %p1344_p5 = pnand %p1343_p4, %p1337_p1 }
  0x2d   :  { %1347 = shalt.err (!%p1344_p5)
}
  0x2e   :  { %67 = dma.hbm_to_vmem [thread:$0]  %s1490_s5, 1024, %s62_s1, [#allocation9], %s1377_s27, %s1377_s27, %s1378_s28  }
  0x2f   :  { %1368 = dma.done.wait [#allocation3], 896  }
  0x30   :  { %1369 = vsyncadd [#allocation3], 4294966400 }
  0x31   :  { %1370 = dma.done.wait [#allocation6], 7296  }
  0x32   :  { %1371 = vsyncadd [#allocation6], 4294960000 }
  0x33   :  { %1372 = dma.done.wait [#allocation9], 1024  }
  0x34   :  { %1373 = vsyncadd [#allocation9], 4294966272  ;;  %v1185_v0 = vld [vmem:[#allocation5 + $0x78] sm:$0xff]   ;;  %v1189_v4 = vld [vmem:[#allocation5 + $0x70] sm:$0xff]   ;;  %v1384_v38 = vmov 0.0   ;;  %vm1385_vm0 = vmmov 0  }
  0x35   :  { %v1186_v1 = vld [vmem:[#allocation5 + $0x38] sm:$0xff]   ;;  %1040 = vmatprep.subr.bf16.mxu0 %v1185_v0  ;;  %v1190_v5 = vld [vmem:[#allocation5 + $0x30] sm:$0xff]   ;;  %v1193_v8 = vld [vmem:[#allocation5 + $0x68] sm:$0xff]   ;;  %vm525_vm1 = vcmask 130048  }
  0x36   :  { %v1187_v2 = vld [vmem:[#allocation5 + $0xf8] sm:$0xff]   ;;  %1041 = vmatpush3.bf16.msra.mxu0 %v1186_v1  ;;  %v1191_v6 = vld [vmem:[#allocation5 + $0xf0] sm:$0xff]   ;;  %v1194_v9 = vld [vmem:[#allocation5 + $0x28] sm:$0xff]  }
  0x37   :  { %v1188_v3 = vld [vmem:[#allocation5 + $0xb8] sm:$0xff]   ;;  %1062 = vmatprep.subr.bf16.mxu1 %v1187_v2  ;;  %1042 = vmatprep.subr.bf16.mxu0 %v1189_v4  ;;  %v1192_v7 = vld [vmem:[#allocation5 + $0xb0] sm:$0xff]   ;;  %v1195_v10 = vld [vmem:[#allocation5 + $0xe8] sm:$0xff]  }
  0x38   :  { %1063 = vmatpush3.bf16.msra.mxu1 %v1188_v3  ;;  %v1196_v11 = vld [vmem:[#allocation5 + $0xa8] sm:$0xff]   ;;  %v1197_v12 = vld [vmem:[#allocation5 + $0x60] sm:$0xff]   ;;  %v1201_v16 = vld [vmem:[#allocation5 + $0x58] sm:$0xff]  }
  0x39   :  { %1064 = vmatprep.subr.bf16.mxu1 %v1191_v6  ;;  %v1198_v13 = vld [vmem:[#allocation5 + $0x20] sm:$0xff]   ;;  %v1202_v17 = vld [vmem:[#allocation5 + $0x18] sm:$0xff]   ;;  %v1205_v20 = vld [vmem:[#allocation5 + $0x50] sm:$0xff]  }
  0x3a   :  { %1043 = vmatpush3.bf16.msra.mxu0 %v1190_v5  ;;  %v1199_v14 = vld [vmem:[#allocation5 + $0xe0] sm:$0xff]   ;;  %v1203_v18 = vld [vmem:[#allocation5 + $0xd8] sm:$0xff]   ;;  %v1206_v21 = vld [vmem:[#allocation5 + $0x10] sm:$0xff]  }
  0x3b   :  { %1044 = vmatprep.subr.bf16.mxu0 %v1193_v8  ;;  %v1200_v15 = vld [vmem:[#allocation5 + $0xa0] sm:$0xff]   ;;  %v1204_v19 = vld [vmem:[#allocation5 + $0x98] sm:$0xff]   ;;  %v1207_v22 = vld [vmem:[#allocation5 + $0xd0] sm:$0xff]  }
  0x3c   :  { %1065 = vmatpush3.bf16.msra.mxu1 %v1192_v7  ;;  %v1208_v23 = vld [vmem:[#allocation5 + $0x90] sm:$0xff]   ;;  %v1209_v24 = vld [vmem:[#allocation5 + $0x48] sm:$0xff]   ;;  %v1213_v28 = vld [vmem:[#allocation5 + $0x40] sm:$0xff]  }
  0x3d   :  { %1066 = vmatprep.subr.bf16.mxu1 %v1195_v10  ;;  %v1210_v25 = vld [vmem:[#allocation5 + $0x8] sm:$0xff]   ;;  %v1214_v29 = vld [vmem:[#allocation5] sm:$0xff]   ;;  %v1220_v34 = vld [vmem:[#allocation5 + $0x178] sm:$0xff]  }
  0x3e   :  { %1045 = vmatpush3.bf16.msra.mxu0 %v1194_v9  ;;  %v1211_v26 = vld [vmem:[#allocation5 + $0xc8] sm:$0xff]   ;;  %v1215_v30 = vld [vmem:[#allocation5 + $0xc0] sm:$0xff]   ;;  %v1223_v36 = vld [vmem:[#allocation2 + $0xc] ss:$28 sps:$4 sm:$0xff]  }
  0x3f   :  { %1046 = vmatprep.subr.bf16.mxu0 %v1197_v12  ;;  %v1212_v27 = vld [vmem:[#allocation5 + $0x88] sm:$0xff]   ;;  %v1219_v33 = vld [vmem:[#allocation5 + $0x80] sm:$0xff]   ;;  %v1224_v37 = vld [vmem:[#allocation5 + $0x138] sm:$0xff]   ;;  %602 = vmatprep.mubr.bf16.mxu1 %v1223_v36 }
  0x40   :  { %1067 = vmatpush3.bf16.msra.mxu1 %v1196_v11  ;;  %v1216_v31 = vld [vmem:[#allocation2] ss:$28 sps:$4 sm:$0xff]   ;;  %v1221_v35 = vld [vmem:[#allocation2 + $0x8] ss:$28 sps:$4 sm:$0xff]   ;;  %v1231_v45 = vld [vmem:[#allocation5 + $0x158] sm:$0xff]  }
  0x41   :  { %1068 = vmatprep.subr.bf16.mxu1 %v1199_v14  ;;  %v1218_v32 = vld [vmem:[#allocation2 + $0x4] ss:$28 sps:$4 sm:$0xff]   ;;  %v1225_v39 = vld [vmem:[#allocation5 + $0x170] sm:$0xff]   ;;  %v1229_v43 = vld [vmem:[#allocation5 + $0x160] sm:$0xff]  }
  0x42   :  { %1047 = vmatpush3.bf16.msra.mxu0 %v1198_v13  ;;  %561 = vmatprep.mubr.bf16.mxu0 %v1218_v32  ;;  %v1226_v40 = vld [vmem:[#allocation5 + $0x130] sm:$0xff]   ;;  %v1227_v41 = vld [vmem:[#allocation5 + $0x168] sm:$0xff]   ;;  %v1230_v44 = vld [vmem:[#allocation5 + $0x120] sm:$0xff]  }
  0x43   :  { %1048 = vmatprep.subr.bf16.mxu0 %v1201_v16  ;;  %v1228_v42 = vld [vmem:[#allocation5 + $0x128] sm:$0xff]   ;;  %v1232_v46 = vld [vmem:[#allocation5 + $0x118] sm:$0xff]   ;;  %v1233_v47 = vld [vmem:[#allocation5 + $0x150] sm:$0xff]  }
  0x44   :  { %1069 = vmatpush3.bf16.msra.mxu1 %v1200_v15  ;;  %v1239_v48 = vld [vmem:[#allocation5 + $0x180] sm:$0xff]   ;;  %v1234_v49 = vld [vmem:[#allocation5 + $0x110] sm:$0xff]   ;;  %v1242_v50 = vld [vmem:[#allocation2 + $0x14] ss:$28 sps:$4 sm:$0xff]  }
  0x45   :  { %1070 = vmatprep.subr.bf16.mxu1 %v1203_v18  ;;  %v1235_v51 = vld [vmem:[#allocation5 + $0x148] sm:$0xff]   ;;  %v1243_v52 = vld [vmem:[#allocation2 + $0x18] ss:$28 sps:$4 sm:$0xff]   ;;  %v1240_v56 = vld [vmem:[#allocation2 + $0x10] ss:$28 sps:$4 sm:$0xff]  }
  0x46   :  { %1049 = vmatpush3.bf16.msra.mxu0 %v1202_v17  ;;  %v1236_v53 = vld [vmem:[#allocation5 + $0x108] sm:$0xff]   ;;  %v1237_v54 = vld [vmem:[#allocation5 + $0x140] sm:$0xff]   ;;  %v1245_v58 = vld [vmem:[#allocation7 + $0x30] sm:$0xff]  }
  0x47   :  { %1050 = vmatprep.subr.bf16.mxu0 %v1205_v20  ;;  %v1238_v55 = vld [vmem:[#allocation5 + $0x100] sm:$0xff]   ;;  %v1246_v59 = vld [vmem:[#allocation7 + $0x28] sm:$0xff]   ;;  %v1247_v60 = vld [vmem:[#allocation7 + $0x20] sm:$0xff]  }
  0x48   :  { %1071 = vmatpush3.bf16.msra.mxu1 %v1204_v19  ;;  %v1244_v57 = vld [vmem:[#allocation7 + $0x38] sm:$0xff]   ;;  %v1249_v62 = vld [vmem:[#allocation7 + $0x10] sm:$0xff]   ;;  %v1250_v63 = vld [vmem:[#allocation7 + $0x8] sm:$0xff]  }
  0x49   :  { %1072 = vmatprep.subr.bf16.mxu1 %v1207_v22  ;;  %v1248_v61 = vld [vmem:[#allocation7 + $0x18] sm:$0xff]   ;;  %v1251_v0 = vld [vmem:[#allocation7] sm:$0xff]   ;;  %v1253_v2 = vld [vmem:[#allocation8 + $0x30] sm:$0xff]  }
  0x4a   :  { %1051 = vmatpush3.bf16.msra.mxu0 %v1206_v21  ;;  %v1252_v1 = vld [vmem:[#allocation8 + $0x38] sm:$0xff]   ;;  %v1254_v3 = vld [vmem:[#allocation8 + $0x28] sm:$0xff]   ;;  %v1255_v4 = vld [vmem:[#allocation8 + $0x20] sm:$0xff]  }
  0x4b   :  { %1052 = vmatprep.subr.bf16.mxu0 %v1209_v24  ;;  %v1256_v5 = vld [vmem:[#allocation8 + $0x18] sm:$0xff]   ;;  %v964_v18 = vld [vmem:[%s1487_s2] ss:$0 sm:$0xff] }
  0x4c   :  { %1073 = vmatpush3.bf16.msra.mxu1 %v1208_v23 }
  0x4d   :  { %1074 = vmatprep.subr.bf16.mxu1 %v1211_v26 }
  0x4e   :  { %1053 = vmatpush3.bf16.msra.mxu0 %v1210_v25 }
  0x4f   :  { %1054 = vmatprep.subr.bf16.mxu0 %v1213_v28 }
  0x50   :  { %1075 = vmatpush3.bf16.msra.mxu1 %v1212_v27 }
  0x51   :  { %1076 = vmatprep.subr.bf16.mxu1 %v1215_v30 }
  0x52   :  { %1055 = vmatpush3.bf16.msra.mxu0 %v1214_v29 }
  0x53   :  { %1084 = vmatprep.subr.bf16.mxu0 %v1220_v34 }
  0x54   :  { %1077 = vmatpush3.bf16.msra.mxu1 %v1219_v33 }
  0x55   :  { %562 = vmatmul.mubr.bf16.vlgmr.msra.gmra.mxu0 %v1216_v31  ;;  %1126 = vmatprep.subr.bf16.mxu1 %v1384_v38 }
  0x56   :  { %1085 = vmatpush3.bf16.msra.mxu0 %v1224_v37  ;;  %643 = vmatprep.mubr.bf16.mxu0 %v1242_v50 }
  0x57   :  { %603 = vmatmul.mubr.bf16.vlgmr.msra.gmra.mxu1 %v1221_v35  ;;  %1086 = vmatprep.subr.bf16.mxu0 %v1225_v39 }
  0x58   :  { %1128 = vmatprep.mubr.msk.bf16.mxu1 %vm1385_vm0, %v1384_v38  ;;  %1127 = vmatpush3.bf16.msra.mxu1 %v1239_v48 }
  0x59   :  { %1132 = vmatprep.subr.bf16.mxu1 %v1384_v38 }
  0x5a   :  { %1087 = vmatpush3.bf16.msra.mxu0 %v1226_v40 }
  0x5b   :  { %1088 = vmatprep.subr.bf16.mxu0 %v1227_v41  ;;  %v1257_v41 = vld [vmem:[#allocation8 + $0x10] sm:$0xff]  }
  0x5e   :  { %1089 = vmatpush3.bf16.msra.mxu0 %v1228_v42  ;;  %v1258_v42 = vld [vmem:[#allocation8 + $0x8] sm:$0xff]  }
  0x5f   :  { %1090 = vmatprep.subr.bf16.mxu0 %v1229_v43  ;;  %1129 = vmatmul.mubr.msk.bf16.vlgmr.msra.gmra.mxu1 %vm525_vm1, %v1243_v52  ;;  %v1259_v43 = vld [vmem:[#allocation8] sm:$0xff]  }
  0x60   :  { %1148 = vmatprep.mubr.msk.bf16.mxu1 %vm1385_vm0, %v1384_v38  ;;  %1133 = vmatpush3.bf16.msra.mxu1 %v1244_v57 }
  0x61   :  { %1134 = vmatprep.subr.bf16.mxu1 %v1384_v38 }
  0x62   :  { %1091 = vmatpush3.bf16.msra.mxu0 %v1230_v44  ;;  %v1022_v44 = vld [vmem:[%s1489_s4] ss:$0 sm:$0xff]  ;;  %s1386_s4 = smov [#allocation10]  }
  0x63   :  { %1092 = vmatprep.subr.bf16.mxu0 %v1231_v45 }
  0x64   :  { %1135 = vmatpush3.bf16.msra.mxu1 %v1245_v58 }
  0x65   :  { %1136 = vmatprep.subr.bf16.mxu1 %v1384_v38 }
  0x66   :  { %1093 = vmatpush3.bf16.msra.mxu0 %v1232_v46 }
  0x67   :  { %1094 = vmatprep.subr.bf16.mxu0 %v1233_v47 }
  0x68   :  { %1137 = vmatpush3.bf16.msra.mxu1 %v1246_v59 }
  0x69   :  { %1138 = vmatprep.subr.bf16.mxu1 %v1384_v38 }
  0x6a   :  { %1095 = vmatpush3.bf16.msra.mxu0 %v1234_v49 }
  0x6b   :  { %1096 = vmatprep.subr.bf16.mxu0 %v1235_v51 }
  0x6c   :  { %1139 = vmatpush3.bf16.msra.mxu1 %v1247_v60 }
  0x6d   :  { %1140 = vmatprep.subr.bf16.mxu1 %v1384_v38 }
  0x6e   :  { %1097 = vmatpush3.bf16.msra.mxu0 %v1236_v53 }
  0x6f   :  { %1098 = vmatprep.subr.bf16.mxu0 %v1237_v54 }
  0x70   :  { %1141 = vmatpush3.bf16.msra.mxu1 %v1248_v61 }
  0x71   :  { %1142 = vmatprep.subr.bf16.mxu1 %v1384_v38 }
  0x72   :  { %1099 = vmatpush3.bf16.msra.mxu0 %v1238_v55 }
  0x73   :  { %1152 = vmatprep.subr.bf16.mxu0 %v1384_v38 }
  0x74   :  { %1143 = vmatpush3.bf16.msra.mxu1 %v1249_v62 }
  0x75   :  { %644 = vmatmul.mubr.bf16.vlgmr.msra.gmra.mxu0 %v1240_v56  ;;  %1144 = vmatprep.subr.bf16.mxu1 %v1384_v38 }
  0x76   :  { %1168 = vmatprep.mubr.msk.bf16.mxu0 %vm1385_vm0, %v1384_v38  ;;  %1153 = vmatpush3.bf16.msra.mxu0 %v1252_v1 }
  0x77   :  { %1154 = vmatprep.subr.bf16.mxu0 %v1384_v38 }
  0x78   :  { %1145 = vmatpush3.bf16.msra.mxu1 %v1250_v63 }
  0x79   :  { %1146 = vmatprep.subr.bf16.mxu1 %v1384_v38 }
  0x7a   :  { %1155 = vmatpush3.bf16.msra.mxu0 %v1253_v2 }
  0x7b   :  { %1156 = vmatprep.subr.bf16.mxu0 %v1384_v38 }
  0x7c   :  { %1147 = vmatpush3.bf16.msra.mxu1 %v1251_v0 }
  0x7e   :  { %1157 = vmatpush3.bf16.msra.mxu0 %v1254_v3 }
  0x7f   :  { %1158 = vmatprep.subr.bf16.mxu0 %v1384_v38 }
  0x82   :  { %1159 = vmatpush3.bf16.msra.mxu0 %v1255_v4 }
  0x83   :  { %1160 = vmatprep.subr.bf16.mxu0 %v1384_v38 }
  0x86   :  { %1161 = vmatpush3.bf16.msra.mxu0 %v1256_v5 }
  0x87   :  { %1162 = vmatprep.subr.bf16.mxu0 %v1384_v38 }
  0x8a   :  { %1163 = vmatpush3.bf16.msra.mxu0 %v1257_v41 }
  0x8b   :  { %1164 = vmatprep.subr.bf16.mxu0 %v1384_v38 }
  0x8e   :  { %1165 = vmatpush3.bf16.msra.mxu0 %v1258_v42 }
  0x8f   :  { %1166 = vmatprep.subr.bf16.mxu0 %v1384_v38  ;;  %v1031_v38 = vld [vmem:[%s1491_s6] ss:$0 sm:$0xff]  ;;  %s950_s6 = sshll.u32 %s1386_s4, 4  ;;  %s951_s6 = int_to_ptr.vmem [resolvable:$true] %s950_s6 }
  0x90   :  { %s1348_s26 = scalar_lea.vmem %s951_s6, 256  ;;  %p1353_p7 = scmp.lt.s32.totalorder %s951_s6, %s951_s6 }
  0x91   :  { %p1349_p6 = scmp.ne.s32.totalorder %s951_s6, %s1348_s26  ;;  %p1354_p8 = scmp.lt.s32.totalorder %s1348_s26, %s1348_s26 }
  0x92   :  { %1167 = vmatpush3.bf16.msra.mxu0 %v1259_v43 }
  0x93   :  { %p1355_p9 = por %p1354_p8, %p1353_p7 }
  0x95   :  { %p1356_p10 = pnand %p1355_p9, %p1349_p6 }
 0x115   :  { %v1056_v9 = vpop.f32.mrf.mxu0 }
 0x117   :  { %v1078_v6 = vpop.f32.mrf.mxu1  ;;  %v1057_v12 = vpop.f32.mrf.mxu0 }
 0x118   :  { %v1058_v17 = vadd.f32 %v1057_v12, %v1056_v9 }
 0x119   :  { %v1079_v7 = vpop.f32.mrf.mxu1  ;;  %v1059_v15 = vpop.f32.mrf.mxu0 }
 0x11a   :  { %v564_v20 = vadd.f32 %v1058_v17, %v964_v18  ;;  %v1080_v21 = vadd.f32 %v1079_v7, %v1078_v6 }
 0x11b   :  { %v1081_v8 = vpop.f32.mrf.mxu1  ;;  %v1060_v19 = vpop.f32.mrf.mxu0 }
 0x11c   :  { %v1061_v22 = vadd.f32 %v1060_v19, %v1059_v15  ;;  %v605_v25 = vadd.f32 %v1080_v21, %v564_v20 }
 0x11d   :  { %v1082_v10 = vpop.f32.mrf.mxu1 }
 0x11e   :  { %v567_v26 = vadd.f32 %v1061_v22, %v964_v18  ;;  %v1083_v27 = vadd.f32 %v1082_v10, %v1081_v8 }
 0x11f   :  { %v686_v11 = vpop.f32.mrf.mxu1 }
 0x120   :  { %v608_v32 = vadd.f32 %v1083_v27, %v567_v26 }
 0x121   :  { %v1130_v13 = vpop.f32.mrf.mxu1 }
 0x123   :  { %v689_v14 = vpop.f32.mrf.mxu1 }
 0x125   :  { %v1131_v16 = vpop.f32.mrf.mxu1 }
 0x135   :  { %v1100_v23 = vpop.f32.mrf.mxu0 }
 0x137   :  { %v1101_v24 = vpop.f32.mrf.mxu0 }
 0x138   :  { %v1102_v28 = vadd.f32 %v1101_v24, %v1100_v23 }
 0x139   :  { %v1103_v29 = vpop.f32.mrf.mxu0 }
 0x13a   :  { %v646_v30 = vadd.f32 %v1102_v28, %v605_v25 }
 0x13b   :  { %v1104_v31 = vpop.f32.mrf.mxu0 }
 0x13c   :  { %v1105_v33 = vadd.f32 %v1104_v31, %v1103_v29  ;;  %v687_v34 = vadd.f32 %v686_v11, %v646_v30 }
 0x13e   :  { %v649_v35 = vadd.f32 %v1105_v33, %v608_v32  ;;  %v693_v37 = vmax.f32 %v687_v34, 0.0 }
 0x140   :  { %v690_v36 = vadd.f32 %v689_v14, %v649_v35 }
 0x142   :  { %v694_v39 = vmax.f32 %v690_v36, 0.0 }
 0x144   :  { %v695_v40 = vpack.c.bf16 %v694_v39, %v693_v37 }
 0x146   :  { %1149 = vmatmul.mubr.bf16.vlgmr.msra.gmra.mxu1 %v695_v40 }
 0x206   :  { %v801_v45 = vpop.f32.mrf.mxu1 }
 0x207   :  { %v802_v47 = vadd.f32 %v1022_v44, %v801_v45 }
 0x208   :  { %v1150_v46 = vpop.f32.mrf.mxu1 }
 0x209   :  { %v808_v51 = vmax.f32 %v802_v47, 0.0 }
 0x20a   :  { %v804_v48 = vpop.f32.mrf.mxu1 }
 0x20b   :  { %v805_v49 = vadd.f32 %v1022_v44, %v804_v48 }
 0x20c   :  { %v1151_v50 = vpop.f32.mrf.mxu1 }
 0x20d   :  { %v809_v52 = vmax.f32 %v805_v49, 0.0 }
 0x20f   :  { %v810_v53 = vpack.c.bf16 %v809_v52, %v808_v51 }
 0x211   :  { %1169 = vmatmul.mubr.bf16.vlgmr.msra.gmra.mxu0 %v810_v53 }
 0x2d1   :  { %v916_v54 = vpop.f32.mrf.mxu0 }
 0x2d2   :  { %v917_v55 = vadd.f32 %v1031_v38, %v916_v54 }
 0x2d3   :  { %v1170_v56 = vpop.f32.mrf.mxu0 }
 0x2d4   :  { %923 = vmax.xlane.f32.xlu0 %v917_v55 }
 0x2d5   :  { %v919_v57 = vpop.f32.mrf.mxu0 }
 0x2d6   :  { %v920_v58 = vadd.f32 %v1031_v38, %v919_v57 }
 0x2d7   :  { %v1171_v59 = vpop.f32.mrf.mxu0 }
 0x2d8   :  { %925 = vmax.xlane.f32.xlu0 %v920_v58 }
 0x35d   :  { %v924_v60 = vpop.xlane.xlu0 %923 }
 0x35e   :  { %v927_v61 = vsub.f32 %v917_v55, %v924_v60 }
 0x360   :  { %v929_v62 = vmul.f32 1.442695, %v927_v61 }
 0x361   :  { %v926_v63 = vpop.xlane.xlu0 %925 }
 0x362   :  { %v928_v0 = vsub.f32 %v920_v58, %v926_v63  ;;  %1260 = vpow2.f32 %v929_v62 }
 0x364   :  { %v931_v1 = vmul.f32 1.442695, %v928_v0 }
 0x366   :  { %1262 = vpow2.f32 %v931_v1 }
 0x36f   :  { %v1261_v2 = vpop.eup %1260 }
 0x370   :  { %933 = vadd.xlane.f32.xlu1 %v1261_v2 }
 0x373   :  { %v1263_v3 = vpop.eup %1262 }
 0x374   :  { %935 = vadd.xlane.f32.xlu1 %v1263_v3 }
 0x3f9   :  { %v934_v4 = vpop.xlane.xlu1 %933 }
 0x3fa   :  { %1264 = vlog2.f32 %v934_v4 }
 0x3fd   :  { %v936_v5 = vpop.xlane.xlu1 %935 }
 0x3fe   :  { %1266 = vlog2.f32 %v936_v5 }
 0x407   :  { %v1265_v6 = vpop.eup %1264 }
 0x408   :  { %v938_v7 = vmul.f32 0.6931472, %v1265_v6 }
 0x40a   :  { %v941_v8 = vsub.f32 %v927_v61, %v938_v7 }
 0x40b   :  { %v1267_v9 = vpop.eup %1266 }
 0x40c   :  { %943 = vst [vmem:[#allocation10] sm:$0xff] %v941_v8  ;;  %v940_v10 = vmul.f32 0.6931472, %v1267_v9 }
 0x40e   :  { %v942_v11 = vsub.f32 %v928_v0, %v940_v10 }
 0x410   :  { %944 = vst [vmem:[#allocation10 + $0x8] sm:$0xff] %v942_v11 }
 0x411   :  { %1359 = shalt.err (!%p1356_p10)
}
 0x412   :  { %s1387_s27 = smov 128   ;;  %s1388_s28 = smov 8  }
 0x413   :  { %956 = dma.vmem_to_hbm [thread:$0]  %s951_s6, 256, %s1492_s7, [#allocation4], %s1387_s27, %s1387_s27, %s1388_s28  }
 0x414   :  { %1374 = dma.done.wait [#allocation4], 256  }
 0x415   :  { %1375 = vsyncadd [#allocation4], 4294967040 }
 0x416   :  { %960 = vsyncpa [#allocation3], 1 }
 0x417   :  { %961 = vsyncpa [#allocation6], 1 }
 0x418   :  { %962 = vsyncpa [#allocation9], 1 }
 0x419   :  { %963 = vsyncpa [#allocation4], 1 }

// kernel: _net_forward_padded.1
= control target key start
LH: loop header
LB: loop body
LE: loop exit
PB: predicated region body
PF: predicated region fallthrough
CT: control target
= control target key end

     0   :  { %12 = vsyncpa [#allocation3], 0  ;;  %s1485_s0 = inlined_call_operand.hbm [shape: bf16[16,784], index: 0, kind: input, shape index: {}]   ;;  %s1486_s1 = inlined_call_operand.hbm [shape: bf16[784,128], index: 1, kind: input, shape index: {}]   ;;  %s1487_s2 = inlined_call_operand.vmem [shape: f32[1,128], index: 2, kind: input, shape index: {}]   ;;  %s1488_s3 = inlined_call_operand.hbm [shape: bf16[128,128], index: 3, kind: input, shape index: {}]   ;;  %s1489_s4 = inlined_call_operand.vmem [shape: f32[1,128], index: 4, kind: input, shape index: {}]   ;;  %s1490_s5 = inlined_call_operand.hbm [shape: bf16[128,128], index: 5, kind: input, shape index: {}]   ;;  %s1491_s6 = inlined_call_operand.vmem [shape: f32[1,128], index: 6, kind: input, shape index: {}]   ;;  %s1492_s7 = inlined_call_operand.hbm [shape: f32[16,128], index: 7, kind: output, shape index: {}]  }
   0x1   :  { %13 = vsyncpa [#allocation6], 0 }
   0x2   :  { %14 = vsyncpa [#allocation9], 0 }
   0x3   :  { %15 = vsyncpa [#allocation4], 0  ;;  %s1376_s24 = smov [#allocation5]  }
   0x4   :  { %s33_s25 = sshll.u32 %s1376_s24, 4  ;;  %s34_s25 = int_to_ptr.vmem [resolvable:$true] %s33_s25 }
   0x5   :  { %s1276_s26 = scalar_lea.vmem %s34_s25, 6272  ;;  %p1281_p1 = scmp.lt.s32.totalorder %s34_s25, %s34_s25 }
   0x6   :  { %p1277_p0 = scmp.ne.s32.totalorder %s34_s25, %s1276_s26  ;;  %p1282_p2 = scmp.lt.s32.totalorder %s1276_s26, %s1276_s26 }
   0x8   :  { %p1283_p3 = por %p1282_p2, %p1281_p1 }
   0xa   :  { %p1284_p4 = pnand %p1283_p3, %p1277_p0 }
   0xc   :  { %1287 = shalt.err (!%p1284_p4)
}
   0xd   :  { %s1377_s27 = smov 64   ;;  %s1378_s28 = smov 4  }
   0xe   :  { %39 = dma.hbm_to_vmem [thread:$0]  %s1486_s1, 6272, %s34_s25, [#allocation6], %s1377_s27, %s1377_s27, %s1378_s28  }
   0xf   :  { %s1379_s8 = smov [#allocation2]  }
  0x10   :  { %s21_s9 = sshll.u32 %s1379_s8, 4  ;;  %s22_s9 = int_to_ptr.vmem [resolvable:$true] %s21_s9 }
  0x11   :  { %s1296_s10 = scalar_lea.vmem %s22_s9, 896  ;;  %p1301_p6 = scmp.lt.s32.totalorder %s22_s9, %s22_s9 }
  0x12   :  { %p1297_p5 = scmp.ne.s32.totalorder %s22_s9, %s1296_s10  ;;  %p1302_p7 = scmp.lt.s32.totalorder %s1296_s10, %s1296_s10 }
  0x14   :  { %p1303_p8 = por %p1302_p7, %p1301_p6 }
  0x16   :  { %p1304_p9 = pnand %p1303_p8, %p1297_p5 }
  0x18   :  { %1307 = shalt.err (!%p1304_p9)
}
  0x19   :  { %s1380_s11 = smov 448   ;;  %s1381_s12 = smov 28  }
  0x1a   :  { %27 = dma.hbm_to_vmem [thread:$0]  %s1485_s0, 896, %s22_s9, [#allocation3], %s1380_s11, %s1380_s11, %s1381_s12  }
  0x1b   :  { %s1382_s15 = smov [#allocation7]   ;;  %s1383_s17 = smov [#allocation8]  }
  0x1c   :  { %s47_s16 = sshll.u32 %s1382_s15, 4  ;;  %s61_s1 = sshll.u32 %s1383_s17, 4  ;;  %s48_s16 = int_to_ptr.vmem [resolvable:$true] %s47_s16  ;;  %s62_s1 = int_to_ptr.vmem [resolvable:$true] %s61_s1 }
  0x1d   :  { %s1316_s18 = scalar_lea.vmem %s48_s16, 1024  ;;  %p1321_p11 = scmp.lt.s32.totalorder %s48_s16, %s48_s16 }
  0x1e   :  { %p1317_p10 = scmp.ne.s32.totalorder %s48_s16, %s1316_s18  ;;  %p1322_p12 = scmp.lt.s32.totalorder %s1316_s18, %s1316_s18 }
  0x20   :  { %p1323_p13 = por %p1322_p12, %p1321_p11 }
  0x22   :  { %p1324_p0 = pnand %p1323_p13, %p1317_p10 }
  0x24   :  { %1327 = shalt.err (!%p1324_p0)
}
  0x25   :  { %53 = dma.hbm_to_vmem [thread:$0]  %s1488_s3, 1024, %s48_s16, [#allocation6], %s1377_s27, %s1377_s27, %s1378_s28  }
  0x26   :  { %s1336_s0 = scalar_lea.vmem %s62_s1, 1024  ;;  %p1341_p2 = scmp.lt.s32.totalorder %s62_s1, %s62_s1 }
  0x27   :  { %p1337_p1 = scmp.ne.s32.totalorder %s62_s1, %s1336_s0  ;;  %p1342_p3 = scmp.lt.s32.totalorder %s1336_s0, %s1336_s0 }
  0x29   :  { %p1343_p4 = por %p1342_p3, %p1341_p2 }
  0x2b   :  { %p1344_p5 = pnand %p1343_p4, %p1337_p1 }
  0x2d   :  { %1347 = shalt.err (!%p1344_p5)
}
  0x2e   :  { %67 = dma.hbm_to_vmem [thread:$0]  %s1490_s5, 1024, %s62_s1, [#allocation9], %s1377_s27, %s1377_s27, %s1378_s28  }
  0x2f   :  { %1368 = dma.done.wait [#allocation3], 896  }
  0x30   :  { %1369 = vsyncadd [#allocation3], 4294966400 }
  0x31   :  { %1370 = dma.done.wait [#allocation6], 7296  }
  0x32   :  { %1371 = vsyncadd [#allocation6], 4294960000 }
  0x33   :  { %1372 = dma.done.wait [#allocation9], 1024  }
  0x34   :  { %1373 = vsyncadd [#allocation9], 4294966272  ;;  %v1185_v0 = vld [vmem:[#allocation5 + $0x78] sm:$0xff]   ;;  %v1189_v4 = vld [vmem:[#allocation5 + $0x70] sm:$0xff]   ;;  %v1384_v38 = vmov 0.0   ;;  %vm1385_vm0 = vmmov 0  }
  0x35   :  { %v1186_v1 = vld [vmem:[#allocation5 + $0x38] sm:$0xff]   ;;  %1040 = vmatprep.subr.bf16.mxu0 %v1185_v0  ;;  %v1190_v5 = vld [vmem:[#allocation5 + $0x30] sm:$0xff]   ;;  %v1193_v8 = vld [vmem:[#allocation5 + $0x68] sm:$0xff]   ;;  %vm525_vm1 = vcmask 130048  }
  0x36   :  { %v1187_v2 = vld [vmem:[#allocation5 + $0xf8] sm:$0xff]   ;;  %1041 = vmatpush3.bf16.msra.mxu0 %v1186_v1  ;;  %v1191_v6 = vld [vmem:[#allocation5 + $0xf0] sm:$0xff]   ;;  %v1194_v9 = vld [vmem:[#allocation5 + $0x28] sm:$0xff]  }
  0x37   :  { %v1188_v3 = vld [vmem:[#allocation5 + $0xb8] sm:$0xff]   ;;  %1062 = vmatprep.subr.bf16.mxu1 %v1187_v2  ;;  %1042 = vmatprep.subr.bf16.mxu0 %v1189_v4  ;;  %v1192_v7 = vld [vmem:[#allocation5 + $0xb0] sm:$0xff]   ;;  %v1195_v10 = vld [vmem:[#allocation5 + $0xe8] sm:$0xff]  }
  0x38   :  { %1063 = vmatpush3.bf16.msra.mxu1 %v1188_v3  ;;  %v1196_v11 = vld [vmem:[#allocation5 + $0xa8] sm:$0xff]   ;;  %v1197_v12 = vld [vmem:[#allocation5 + $0x60] sm:$0xff]   ;;  %v1201_v16 = vld [vmem:[#allocation5 + $0x58] sm:$0xff]  }
  0x39   :  { %1064 = vmatprep.subr.bf16.mxu1 %v1191_v6  ;;  %v1198_v13 = vld [vmem:[#allocation5 + $0x20] sm:$0xff]   ;;  %v1202_v17 = vld [vmem:[#allocation5 + $0x18] sm:$0xff]   ;;  %v1205_v20 = vld [vmem:[#allocation5 + $0x50] sm:$0xff]  }
  0x3a   :  { %1043 = vmatpush3.bf16.msra.mxu0 %v1190_v5  ;;  %v1199_v14 = vld [vmem:[#allocation5 + $0xe0] sm:$0xff]   ;;  %v1203_v18 = vld [vmem:[#allocation5 + $0xd8] sm:$0xff]   ;;  %v1206_v21 = vld [vmem:[#allocation5 + $0x10] sm:$0xff]  }
  0x3b   :  { %1044 = vmatprep.subr.bf16.mxu0 %v1193_v8  ;;  %v1200_v15 = vld [vmem:[#allocation5 + $0xa0] sm:$0xff]   ;;  %v1204_v19 = vld [vmem:[#allocation5 + $0x98] sm:$0xff]   ;;  %v1207_v22 = vld [vmem:[#allocation5 + $0xd0] sm:$0xff]  }
  0x3c   :  { %1065 = vmatpush3.bf16.msra.mxu1 %v1192_v7  ;;  %v1208_v23 = vld [vmem:[#allocation5 + $0x90] sm:$0xff]   ;;  %v1209_v24 = vld [vmem:[#allocation5 + $0x48] sm:$0xff]   ;;  %v1213_v28 = vld [vmem:[#allocation5 + $0x40] sm:$0xff]  }
  0x3d   :  { %1066 = vmatprep.subr.bf16.mxu1 %v1195_v10  ;;  %v1210_v25 = vld [vmem:[#allocation5 + $0x8] sm:$0xff]   ;;  %v1214_v29 = vld [vmem:[#allocation5] sm:$0xff]   ;;  %v1220_v34 = vld [vmem:[#allocation5 + $0x178] sm:$0xff]  }
  0x3e   :  { %1045 = vmatpush3.bf16.msra.mxu0 %v1194_v9  ;;  %v1211_v26 = vld [vmem:[#allocation5 + $0xc8] sm:$0xff]   ;;  %v1215_v30 = vld [vmem:[#allocation5 + $0xc0] sm:$0xff]   ;;  %v1223_v36 = vld [vmem:[#allocation2 + $0xc] ss:$28 sps:$4 sm:$0xff]  }
  0x3f   :  { %1046 = vmatprep.subr.bf16.mxu0 %v1197_v12  ;;  %v1212_v27 = vld [vmem:[#allocation5 + $0x88] sm:$0xff]   ;;  %v1219_v33 = vld [vmem:[#allocation5 + $0x80] sm:$0xff]   ;;  %v1224_v37 = vld [vmem:[#allocation5 + $0x138] sm:$0xff]   ;;  %602 = vmatprep.mubr.bf16.mxu1 %v1223_v36 }
  0x40   :  { %1067 = vmatpush3.bf16.msra.mxu1 %v1196_v11  ;;  %v1216_v31 = vld [vmem:[#allocation2] ss:$28 sps:$4 sm:$0xff]   ;;  %v1221_v35 = vld [vmem:[#allocation2 + $0x8] ss:$28 sps:$4 sm:$0xff]   ;;  %v1231_v45 = vld [vmem:[#allocation5 + $0x158] sm:$0xff]  }
  0x41   :  { %1068 = vmatprep.subr.bf16.mxu1 %v1199_v14  ;;  %v1218_v32 = vld [vmem:[#allocation2 + $0x4] ss:$28 sps:$4 sm:$0xff]   ;;  %v1225_v39 = vld [vmem:[#allocation5 + $0x170] sm:$0xff]   ;;  %v1229_v43 = vld [vmem:[#allocation5 + $0x160] sm:$0xff]  }
  0x42   :  { %1047 = vmatpush3.bf16.msra.mxu0 %v1198_v13  ;;  %561 = vmatprep.mubr.bf16.mxu0 %v1218_v32  ;;  %v1226_v40 = vld [vmem:[#allocation5 + $0x130] sm:$0xff]   ;;  %v1227_v41 = vld [vmem:[#allocation5 + $0x168] sm:$0xff]   ;;  %v1230_v44 = vld [vmem:[#allocation5 + $0x120] sm:$0xff]  }
  0x43   :  { %1048 = vmatprep.subr.bf16.mxu0 %v1201_v16  ;;  %v1228_v42 = vld [vmem:[#allocation5 + $0x128] sm:$0xff]   ;;  %v1232_v46 = vld [vmem:[#allocation5 + $0x118] sm:$0xff]   ;;  %v1233_v47 = vld [vmem:[#allocation5 + $0x150] sm:$0xff]  }
  0x44   :  { %1069 = vmatpush3.bf16.msra.mxu1 %v1200_v15  ;;  %v1239_v48 = vld [vmem:[#allocation5 + $0x180] sm:$0xff]   ;;  %v1234_v49 = vld [vmem:[#allocation5 + $0x110] sm:$0xff]   ;;  %v1242_v50 = vld [vmem:[#allocation2 + $0x14] ss:$28 sps:$4 sm:$0xff]  }
  0x45   :  { %1070 = vmatprep.subr.bf16.mxu1 %v1203_v18  ;;  %v1235_v51 = vld [vmem:[#allocation5 + $0x148] sm:$0xff]   ;;  %v1243_v52 = vld [vmem:[#allocation2 + $0x18] ss:$28 sps:$4 sm:$0xff]   ;;  %v1240_v56 = vld [vmem:[#allocation2 + $0x10] ss:$28 sps:$4 sm:$0xff]  }
  0x46   :  { %1049 = vmatpush3.bf16.msra.mxu0 %v1202_v17  ;;  %v1236_v53 = vld [vmem:[#allocation5 + $0x108] sm:$0xff]   ;;  %v1237_v54 = vld [vmem:[#allocation5 + $0x140] sm:$0xff]   ;;  %v1245_v58 = vld [vmem:[#allocation7 + $0x30] sm:$0xff]  }
  0x47   :  { %1050 = vmatprep.subr.bf16.mxu0 %v1205_v20  ;;  %v1238_v55 = vld [vmem:[#allocation5 + $0x100] sm:$0xff]   ;;  %v1246_v59 = vld [vmem:[#allocation7 + $0x28] sm:$0xff]   ;;  %v1247_v60 = vld [vmem:[#allocation7 + $0x20] sm:$0xff]  }
  0x48   :  { %1071 = vmatpush3.bf16.msra.mxu1 %v1204_v19  ;;  %v1244_v57 = vld [vmem:[#allocation7 + $0x38] sm:$0xff]   ;;  %v1249_v62 = vld [vmem:[#allocation7 + $0x10] sm:$0xff]   ;;  %v1250_v63 = vld [vmem:[#allocation7 + $0x8] sm:$0xff]  }
  0x49   :  { %1072 = vmatprep.subr.bf16.mxu1 %v1207_v22  ;;  %v1248_v61 = vld [vmem:[#allocation7 + $0x18] sm:$0xff]   ;;  %v1251_v0 = vld [vmem:[#allocation7] sm:$0xff]   ;;  %v1253_v2 = vld [vmem:[#allocation8 + $0x30] sm:$0xff]  }
  0x4a   :  { %1051 = vmatpush3.bf16.msra.mxu0 %v1206_v21  ;;  %v1252_v1 = vld [vmem:[#allocation8 + $0x38] sm:$0xff]   ;;  %v1254_v3 = vld [vmem:[#allocation8 + $0x28] sm:$0xff]   ;;  %v1255_v4 = vld [vmem:[#allocation8 + $0x20] sm:$0xff]  }
  0x4b   :  { %1052 = vmatprep.subr.bf16.mxu0 %v1209_v24  ;;  %v1256_v5 = vld [vmem:[#allocation8 + $0x18] sm:$0xff]   ;;  %v964_v18 = vld [vmem:[%s1487_s2] ss:$0 sm:$0xff] }
  0x4c   :  { %1073 = vmatpush3.bf16.msra.mxu1 %v1208_v23 }
  0x4d   :  { %1074 = vmatprep.subr.bf16.mxu1 %v1211_v26 }
  0x4e   :  { %1053 = vmatpush3.bf16.msra.mxu0 %v1210_v25 }
  0x4f   :  { %1054 = vmatprep.subr.bf16.mxu0 %v1213_v28 }
  0x50   :  { %1075 = vmatpush3.bf16.msra.mxu1 %v1212_v27 }
  0x51   :  { %1076 = vmatprep.subr.bf16.mxu1 %v1215_v30 }
  0x52   :  { %1055 = vmatpush3.bf16.msra.mxu0 %v1214_v29 }
  0x53   :  { %1084 = vmatprep.subr.bf16.mxu0 %v1220_v34 }
  0x54   :  { %1077 = vmatpush3.bf16.msra.mxu1 %v1219_v33 }
  0x55   :  { %562 = vmatmul.mubr.bf16.vlgmr.msra.gmra.mxu0 %v1216_v31  ;;  %1126 = vmatprep.subr.bf16.mxu1 %v1384_v38 }
  0x56   :  { %1085 = vmatpush3.bf16.msra.mxu0 %v1224_v37  ;;  %643 = vmatprep.mubr.bf16.mxu0 %v1242_v50 }
  0x57   :  { %603 = vmatmul.mubr.bf16.vlgmr.msra.gmra.mxu1 %v1221_v35  ;;  %1086 = vmatprep.subr.bf16.mxu0 %v1225_v39 }
  0x58   :  { %1128 = vmatprep.mubr.msk.bf16.mxu1 %vm1385_vm0, %v1384_v38  ;;  %1127 = vmatpush3.bf16.msra.mxu1 %v1239_v48 }
  0x59   :  { %1132 = vmatprep.subr.bf16.mxu1 %v1384_v38 }
  0x5a   :  { %1087 = vmatpush3.bf16.msra.mxu0 %v1226_v40 }
  0x5b   :  { %1088 = vmatprep.subr.bf16.mxu0 %v1227_v41  ;;  %v1257_v41 = vld [vmem:[#allocation8 + $0x10] sm:$0xff]  }
  0x5e   :  { %1089 = vmatpush3.bf16.msra.mxu0 %v1228_v42  ;;  %v1258_v42 = vld [vmem:[#allocation8 + $0x8] sm:$0xff]  }
  0x5f   :  { %1090 = vmatprep.subr.bf16.mxu0 %v1229_v43  ;;  %1129 = vmatmul.mubr.msk.bf16.vlgmr.msra.gmra.mxu1 %vm525_vm1, %v1243_v52  ;;  %v1259_v43 = vld [vmem:[#allocation8] sm:$0xff]  }
  0x60   :  { %1148 = vmatprep.mubr.msk.bf16.mxu1 %vm1385_vm0, %v1384_v38  ;;  %1133 = vmatpush3.bf16.msra.mxu1 %v1244_v57 }
  0x61   :  { %1134 = vmatprep.subr.bf16.mxu1 %v1384_v38 }
  0x62   :  { %1091 = vmatpush3.bf16.msra.mxu0 %v1230_v44  ;;  %v1022_v44 = vld [vmem:[%s1489_s4] ss:$0 sm:$0xff]  ;;  %s1386_s4 = smov [#allocation10]  }
  0x63   :  { %1092 = vmatprep.subr.bf16.mxu0 %v1231_v45 }
  0x64   :  { %1135 = vmatpush3.bf16.msra.mxu1 %v1245_v58 }
  0x65   :  { %1136 = vmatprep.subr.bf16.mxu1 %v1384_v38 }
  0x66   :  { %1093 = vmatpush3.bf16.msra.mxu0 %v1232_v46 }
  0x67   :  { %1094 = vmatprep.subr.bf16.mxu0 %v1233_v47 }
  0x68   :  { %1137 = vmatpush3.bf16.msra.mxu1 %v1246_v59 }
  0x69   :  { %1138 = vmatprep.subr.bf16.mxu1 %v1384_v38 }
  0x6a   :  { %1095 = vmatpush3.bf16.msra.mxu0 %v1234_v49 }
  0x6b   :  { %1096 = vmatprep.subr.bf16.mxu0 %v1235_v51 }
  0x6c   :  { %1139 = vmatpush3.bf16.msra.mxu1 %v1247_v60 }
  0x6d   :  { %1140 = vmatprep.subr.bf16.mxu1 %v1384_v38 }
  0x6e   :  { %1097 = vmatpush3.bf16.msra.mxu0 %v1236_v53 }
  0x6f   :  { %1098 = vmatprep.subr.bf16.mxu0 %v1237_v54 }
  0x70   :  { %1141 = vmatpush3.bf16.msra.mxu1 %v1248_v61 }
  0x71   :  { %1142 = vmatprep.subr.bf16.mxu1 %v1384_v38 }
  0x72   :  { %1099 = vmatpush3.bf16.msra.mxu0 %v1238_v55 }
  0x73   :  { %1152 = vmatprep.subr.bf16.mxu0 %v1384_v38 }
  0x74   :  { %1143 = vmatpush3.bf16.msra.mxu1 %v1249_v62 }
  0x75   :  { %644 = vmatmul.mubr.bf16.vlgmr.msra.gmra.mxu0 %v1240_v56  ;;  %1144 = vmatprep.subr.bf16.mxu1 %v1384_v38 }
  0x76   :  { %1168 = vmatprep.mubr.msk.bf16.mxu0 %vm1385_vm0, %v1384_v38  ;;  %1153 = vmatpush3.bf16.msra.mxu0 %v1252_v1 }
  0x77   :  { %1154 = vmatprep.subr.bf16.mxu0 %v1384_v38 }
  0x78   :  { %1145 = vmatpush3.bf16.msra.mxu1 %v1250_v63 }
  0x79   :  { %1146 = vmatprep.subr.bf16.mxu1 %v1384_v38 }
  0x7a   :  { %1155 = vmatpush3.bf16.msra.mxu0 %v1253_v2 }
  0x7b   :  { %1156 = vmatprep.subr.bf16.mxu0 %v1384_v38 }
  0x7c   :  { %1147 = vmatpush3.bf16.msra.mxu1 %v1251_v0 }
  0x7e   :  { %1157 = vmatpush3.bf16.msra.mxu0 %v1254_v3 }
  0x7f   :  { %1158 = vmatprep.subr.bf16.mxu0 %v1384_v38 }
  0x82   :  { %1159 = vmatpush3.bf16.msra.mxu0 %v1255_v4 }
  0x83   :  { %1160 = vmatprep.subr.bf16.mxu0 %v1384_v38 }
  0x86   :  { %1161 = vmatpush3.bf16.msra.mxu0 %v1256_v5 }
  0x87   :  { %1162 = vmatprep.subr.bf16.mxu0 %v1384_v38 }
  0x8a   :  { %1163 = vmatpush3.bf16.msra.mxu0 %v1257_v41 }
  0x8b   :  { %1164 = vmatprep.subr.bf16.mxu0 %v1384_v38 }
  0x8e   :  { %1165 = vmatpush3.bf16.msra.mxu0 %v1258_v42 }
  0x8f   :  { %1166 = vmatprep.subr.bf16.mxu0 %v1384_v38  ;;  %v1031_v38 = vld [vmem:[%s1491_s6] ss:$0 sm:$0xff]  ;;  %s950_s6 = sshll.u32 %s1386_s4, 4  ;;  %s951_s6 = int_to_ptr.vmem [resolvable:$true] %s950_s6 }
  0x90   :  { %s1348_s26 = scalar_lea.vmem %s951_s6, 256  ;;  %p1353_p7 = scmp.lt.s32.totalorder %s951_s6, %s951_s6 }
  0x91   :  { %p1349_p6 = scmp.ne.s32.totalorder %s951_s6, %s1348_s26  ;;  %p1354_p8 = scmp.lt.s32.totalorder %s1348_s26, %s1348_s26 }
  0x92   :  { %1167 = vmatpush3.bf16.msra.mxu0 %v1259_v43 }
  0x93   :  { %p1355_p9 = por %p1354_p8, %p1353_p7 }
  0x95   :  { %p1356_p10 = pnand %p1355_p9, %p1349_p6 }
 0x115   :  { %v1056_v9 = vpop.f32.mrf.mxu0 }
 0x117   :  { %v1078_v6 = vpop.f32.mrf.mxu1  ;;  %v1057_v12 = vpop.f32.mrf.mxu0 }
 0x118   :  { %v1058_v17 = vadd.f32 %v1057_v12, %v1056_v9 }
 0x119   :  { %v1079_v7 = vpop.f32.mrf.mxu1  ;;  %v1059_v15 = vpop.f32.mrf.mxu0 }
 0x11a   :  { %v564_v20 = vadd.f32 %v1058_v17, %v964_v18  ;;  %v1080_v21 = vadd.f32 %v1079_v7, %v1078_v6 }
 0x11b   :  { %v1081_v8 = vpop.f32.mrf.mxu1  ;;  %v1060_v19 = vpop.f32.mrf.mxu0 }
 0x11c   :  { %v1061_v22 = vadd.f32 %v1060_v19, %v1059_v15  ;;  %v605_v25 = vadd.f32 %v1080_v21, %v564_v20 }
 0x11d   :  { %v1082_v10 = vpop.f32.mrf.mxu1 }
 0x11e   :  { %v567_v26 = vadd.f32 %v1061_v22, %v964_v18  ;;  %v1083_v27 = vadd.f32 %v1082_v10, %v1081_v8 }
 0x11f   :  { %v686_v11 = vpop.f32.mrf.mxu1 }
 0x120   :  { %v608_v32 = vadd.f32 %v1083_v27, %v567_v26 }
 0x121   :  { %v1130_v13 = vpop.f32.mrf.mxu1 }
 0x123   :  { %v689_v14 = vpop.f32.mrf.mxu1 }
 0x125   :  { %v1131_v16 = vpop.f32.mrf.mxu1 }
 0x135   :  { %v1100_v23 = vpop.f32.mrf.mxu0 }
 0x137   :  { %v1101_v24 = vpop.f32.mrf.mxu0 }
 0x138   :  { %v1102_v28 = vadd.f32 %v1101_v24, %v1100_v23 }
 0x139   :  { %v1103_v29 = vpop.f32.mrf.mxu0 }
 0x13a   :  { %v646_v30 = vadd.f32 %v1102_v28, %v605_v25 }
 0x13b   :  { %v1104_v31 = vpop.f32.mrf.mxu0 }
 0x13c   :  { %v1105_v33 = vadd.f32 %v1104_v31, %v1103_v29  ;;  %v687_v34 = vadd.f32 %v686_v11, %v646_v30 }
 0x13e   :  { %v649_v35 = vadd.f32 %v1105_v33, %v608_v32  ;;  %v693_v37 = vmax.f32 %v687_v34, 0.0 }
 0x140   :  { %v690_v36 = vadd.f32 %v689_v14, %v649_v35 }
 0x142   :  { %v694_v39 = vmax.f32 %v690_v36, 0.0 }
 0x144   :  { %v695_v40 = vpack.c.bf16 %v694_v39, %v693_v37 }
 0x146   :  { %1149 = vmatmul.mubr.bf16.vlgmr.msra.gmra.mxu1 %v695_v40 }
 0x206   :  { %v801_v45 = vpop.f32.mrf.mxu1 }
 0x207   :  { %v802_v47 = vadd.f32 %v1022_v44, %v801_v45 }
 0x208   :  { %v1150_v46 = vpop.f32.mrf.mxu1 }
 0x209   :  { %v808_v51 = vmax.f32 %v802_v47, 0.0 }
 0x20a   :  { %v804_v48 = vpop.f32.mrf.mxu1 }
 0x20b   :  { %v805_v49 = vadd.f32 %v1022_v44, %v804_v48 }
 0x20c   :  { %v1151_v50 = vpop.f32.mrf.mxu1 }
 0x20d   :  { %v809_v52 = vmax.f32 %v805_v49, 0.0 }
 0x20f   :  { %v810_v53 = vpack.c.bf16 %v809_v52, %v808_v51 }
 0x211   :  { %1169 = vmatmul.mubr.bf16.vlgmr.msra.gmra.mxu0 %v810_v53 }
 0x2d1   :  { %v916_v54 = vpop.f32.mrf.mxu0 }
 0x2d2   :  { %v917_v55 = vadd.f32 %v1031_v38, %v916_v54 }
 0x2d3   :  { %v1170_v56 = vpop.f32.mrf.mxu0 }
 0x2d4   :  { %923 = vmax.xlane.f32.xlu0 %v917_v55 }
 0x2d5   :  { %v919_v57 = vpop.f32.mrf.mxu0 }
 0x2d6   :  { %v920_v58 = vadd.f32 %v1031_v38, %v919_v57 }
 0x2d7   :  { %v1171_v59 = vpop.f32.mrf.mxu0 }
 0x2d8   :  { %925 = vmax.xlane.f32.xlu0 %v920_v58 }
 0x35d   :  { %v924_v60 = vpop.xlane.xlu0 %923 }
 0x35e   :  { %v927_v61 = vsub.f32 %v917_v55, %v924_v60 }
 0x360   :  { %v929_v62 = vmul.f32 1.442695, %v927_v61 }
 0x361   :  { %v926_v63 = vpop.xlane.xlu0 %925 }
 0x362   :  { %v928_v0 = vsub.f32 %v920_v58, %v926_v63  ;;  %1260 = vpow2.f32 %v929_v62 }
 0x364   :  { %v931_v1 = vmul.f32 1.442695, %v928_v0 }
 0x366   :  { %1262 = vpow2.f32 %v931_v1 }
 0x36f   :  { %v1261_v2 = vpop.eup %1260 }
 0x370   :  { %933 = vadd.xlane.f32.xlu1 %v1261_v2 }
 0x373   :  { %v1263_v3 = vpop.eup %1262 }
 0x374   :  { %935 = vadd.xlane.f32.xlu1 %v1263_v3 }
 0x3f9   :  { %v934_v4 = vpop.xlane.xlu1 %933 }
 0x3fa   :  { %1264 = vlog2.f32 %v934_v4 }
 0x3fd   :  { %v936_v5 = vpop.xlane.xlu1 %935 }
 0x3fe   :  { %1266 = vlog2.f32 %v936_v5 }
 0x407   :  { %v1265_v6 = vpop.eup %1264 }
 0x408   :  { %v938_v7 = vmul.f32 0.6931472, %v1265_v6 }
 0x40a   :  { %v941_v8 = vsub.f32 %v927_v61, %v938_v7 }
 0x40b   :  { %v1267_v9 = vpop.eup %1266 }
 0x40c   :  { %943 = vst [vmem:[#allocation10] sm:$0xff] %v941_v8  ;;  %v940_v10 = vmul.f32 0.6931472, %v1267_v9 }
 0x40e   :  { %v942_v11 = vsub.f32 %v928_v0, %v940_v10 }
 0x410   :  { %944 = vst [vmem:[#allocation10 + $0x8] sm:$0xff] %v942_v11 }
 0x411   :  { %1359 = shalt.err (!%p1356_p10)
}
 0x412   :  { %s1387_s27 = smov 128   ;;  %s1388_s28 = smov 8  }
 0x413   :  { %956 = dma.vmem_to_hbm [thread:$0]  %s951_s6, 256, %s1492_s7, [#allocation4], %s1387_s27, %s1387_s27, %s1388_s28  }
 0x414   :  { %1374 = dma.done.wait [#allocation4], 256  }
 0x415   :  { %1375 = vsyncadd [#allocation4], 4294967040 }
 0x416   :  { %960 = vsyncpa [#allocation3], 1 }
 0x417   :  { %961 = vsyncpa [#allocation6], 1 }
 0x418   :  { %962 = vsyncpa [#allocation9], 1 }
 0x419   :  { %963 = vsyncpa [#allocation4], 1 }

</bundles_post_ra>
